<compile_context>
chip_gen: v5e
topology: v5e:2x2
jax: 0.10.0
libtpu: 0.0.40
codegen_flags: <defaults>
</compile_context>

<pallas_src>
import jax
import jax.numpy as jnp
from jax.experimental import pallas as pl
from jax.experimental.pallas import tpu as pltpu

H1 = 128
H2 = 256


def _round_up(v, m):
    return (v + m - 1) // m * m


def generator_kernel(x_ref, w1_ref, b1_ref, w2_ref, b2_ref, w3_ref, b3_ref,
                     o_ref):
    # Fused 3-layer MLP on one batch tile.  x arrives as f32 straight from
    # HBM and is cast to the matmul dtype on the VPU (free in this HBM-bound
    # regime).  All matmuls accumulate in f32 on the MXU; bias add, ReLU and
    # tanh run in f32; the tanh result is stored in o_ref's dtype (bf16 by
    # default), which halves output HBM traffic.
    x = x_ref[...].astype(w1_ref.dtype)
    h1 = jnp.dot(x, w1_ref[...], preferred_element_type=jnp.float32)
    h1 = jnp.maximum(h1 + b1_ref[...], 0.0)
    h2 = jnp.dot(h1.astype(w2_ref.dtype), w2_ref[...],
                 preferred_element_type=jnp.float32)
    h2 = jnp.maximum(h2 + b2_ref[...], 0.0)
    h3 = jnp.dot(h2.astype(w3_ref.dtype), w3_ref[...],
                 preferred_element_type=jnp.float32)
    o_ref[...] = jnp.tanh(h3 + b3_ref[...]).astype(o_ref.dtype)


def prepare_params(params, *, compute_dtype=jnp.bfloat16):
    """One-time prep outside the hot path: cast weights to the MXU operand
    dtype and pad the last-layer weight/bias to a lane-dense multiple of 128.
    The per-call forward then contains exactly one pallas_call and no
    recurring cast/pad XLA ops."""
    out_dim = params["w3"].shape[1]
    out_pad = _round_up(out_dim, 128)
    cd = compute_dtype
    return {
        "w1": params["w1"].astype(cd),
        "b1": params["b1"].astype(jnp.float32).reshape(1, H1),
        "w2": params["w2"].astype(cd),
        "b2": params["b2"].astype(jnp.float32).reshape(1, H2),
        "w3": jnp.pad(params["w3"].astype(cd),
                      ((0, 0), (0, out_pad - out_dim))),
        "b3": jnp.pad(params["b3"].astype(jnp.float32).reshape(1, out_dim),
                      ((0, 0), (0, out_pad - out_dim))),
        "out_dim": out_dim,
    }


def generator_forward(x, params, *, tile_b=1024, out_dtype=jnp.bfloat16):
    """x: (B, input_dim) float32.  params: raw f32 dict (w1,b1,...,b3) or the
    output of prepare_params (preferred for repeated calls)."""
    prepared = params if "out_dim" in params else prepare_params(params)

    B, in_dim = x.shape
    out_dim = prepared["out_dim"]
    out_pad = prepared["w3"].shape[1]

    # Batch padded only to the sublane multiple (8); the last grid step may be
    # ragged (cdiv grid), so unlucky batch sizes don't double the work.
    B_pad = _round_up(B, 8)

    tile_b = max(8, _round_up(tile_b, 8))
    tile_b = min(tile_b, B_pad)
    # Keep >= 2 grid steps for mid/large batches so the "parallel" batch axis
    # actually shards across both v7x TensorCores (harmless on v5e/v6e).
    if B_pad >= 512:
        tile_b = min(tile_b, _round_up(pl.cdiv(B_pad, 2), 8))

    x_in = x if B_pad == B else jnp.pad(x, ((0, B_pad - B), (0, 0)))

    grid = (pl.cdiv(B_pad, tile_b),)

    # Batch is tiled along the (parallel) grid axis; weights/biases use a
    # constant index_map so they stay resident in VMEM across grid steps.
    in_specs = [
        pl.BlockSpec((tile_b, in_dim), lambda i: (i, 0)),   # x tile (f32)
        pl.BlockSpec((in_dim, H1), lambda i: (0, 0)),       # w1
        pl.BlockSpec((1, H1), lambda i: (0, 0)),            # b1
        pl.BlockSpec((H1, H2), lambda i: (0, 0)),           # w2
        pl.BlockSpec((1, H2), lambda i: (0, 0)),            # b2
        pl.BlockSpec((H2, out_pad), lambda i: (0, 0)),      # w3 (lane-padded)
        pl.BlockSpec((1, out_pad), lambda i: (0, 0)),       # b3 (lane-padded)
    ]
    out_spec = pl.BlockSpec((tile_b, out_pad), lambda i: (i, 0))

    out_padded = pl.pallas_call(
        generator_kernel,
        out_shape=jax.ShapeDtypeStruct((B_pad, out_pad), out_dtype),
        grid_spec=pl.GridSpec(
            grid=grid,
            in_specs=in_specs,
            out_specs=out_spec,
        ),
        compiler_params=pltpu.CompilerParams(
            dimension_semantics=("parallel",),
            vmem_limit_bytes=32 * 1024 * 1024,
        ),
    )(x_in, prepared["w1"], prepared["b1"], prepared["w2"], prepared["b2"],
      prepared["w3"], prepared["b3"])

    # Slice only if padding was actually added (no-op copy otherwise).
    if B_pad != B or out_pad != out_dim:
        return out_padded[:B, :out_dim]
    return out_padded


def init_params(key, input_dim, output_dim):
    """Deterministic synthetic init (PyTorch-like uniform(-1/sqrt(fan_in)))."""
    ks = jax.random.split(key, 6)

    def uniform(k, shape, fan_in):
        bound = 1.0 / jnp.sqrt(fan_in)
        return jax.random.uniform(k, shape, jnp.float32, -bound, bound)

    return {
        "w1": uniform(ks[0], (input_dim, H1), input_dim),
        "b1": uniform(ks[1], (1, H1), input_dim),
        "w2": uniform(ks[2], (H1, H2), H1),
        "b2": uniform(ks[3], (1, H2), H1),
        "w3": uniform(ks[4], (H2, output_dim), H2),
        "b3": uniform(ks[5], (1, output_dim), H2),
    }


def reference_forward_mixed(x, p, cd=jnp.bfloat16):
    """Same numerics as the kernel: bf16 matmul operands, f32 accumulation."""
    h1 = jnp.dot(x.astype(cd), p["w1"].astype(cd),
                 preferred_element_type=jnp.float32) + p["b1"]
    h1 = jnp.maximum(h1, 0.0)
    h2 = jnp.dot(h1.astype(cd), p["w2"].astype(cd),
                 preferred_element_type=jnp.float32) + p["b2"]
    h2 = jnp.maximum(h2, 0.0)
    h3 = jnp.dot(h2.astype(cd), p["w3"].astype(cd),
                 preferred_element_type=jnp.float32) + p["b3"]
    return jnp.tanh(h3)


def reference_forward_f32(x, p):
    h1 = jnp.maximum(x @ p["w1"] + p["b1"], 0.0)
    h2 = jnp.maximum(h1 @ p["w2"] + p["b2"], 0.0)
    return jnp.tanh(h2 @ p["w3"] + p["b3"])


if __name__ == "__main__":
    # Small synthetic shapes consistent with the module: feature dimension of
    # the CSV (minus the label column) stands in as input_dim == output_dim.
    batch = 8
    input_dim = 32
    output_dim = input_dim

    key = jax.random.PRNGKey(0)
    k_x, k_p = jax.random.split(key)
    x = jax.random.normal(k_x, (batch, input_dim), dtype=jnp.float32)
    params = init_params(k_p, input_dim, output_dim)

    prepared = prepare_params(params)          # one-time cast/pad, off hot path
    out = generator_forward(x, prepared)
    out = jax.block_until_ready(out)
    assert out.shape == (batch, output_dim)

    out_f32 = out.astype(jnp.float32)

    # Check vs. a reference with identical bf16-operand / f32-accum math
    # (tolerance covers the bf16 output store and the EUP tanh approximation).
    ref_mixed = reference_forward_mixed(x, params)
    assert jnp.allclose(out_f32, ref_mixed, atol=2e-2, rtol=2e-2), \
        "mismatch vs mixed-precision reference"

    # Loose check vs. the pure-f32 PyTorch-equivalent reference (bf16 operand
    # cast gives ~1e-2 level error on pre-activations).
    ref_f32 = reference_forward_f32(x, params)
    assert jnp.allclose(out_f32, ref_f32, atol=5e-2, rtol=5e-2), \
        "mismatch vs f32 reference"

    print("KERNEL_OK")
</pallas_src>

<mosaic_0001>
module attributes {stable_mosaic.version = 11 : i64} {
  func.func @generator_kernel(%arg0: i32, %arg1: memref<8x32xf32, #tpu.memory_space<vmem>>, %arg2: memref<32x128xbf16, #tpu.memory_space<vmem>>, %arg3: memref<1x128xf32, #tpu.memory_space<vmem>>, %arg4: memref<128x256xbf16, #tpu.memory_space<vmem>>, %arg5: memref<1x256xf32, #tpu.memory_space<vmem>>, %arg6: memref<256x128xbf16, #tpu.memory_space<vmem>>, %arg7: memref<1x128xf32, #tpu.memory_space<vmem>>, %arg8: memref<8x128xbf16, #tpu.memory_space<vmem>>) attributes {dimension_semantics = [#tpu.dimension_semantics<parallel>], iteration_bounds = array<i64: 1>, scalar_prefetch = 0 : i64, scratch_operands = 0 : i64, tpu.core_type = #tpu.core_type<tc>, window_params = [{transform_indices = @transform_0, window_bounds = array<i64: 8, 32>}, {pipeline_mode = #tpu.pipeline_mode<synchronous>, transform_indices = @transform_1, window_bounds = array<i64: 32, 128>}, {pipeline_mode = #tpu.pipeline_mode<synchronous>, transform_indices = @transform_2, window_bounds = array<i64: 1, 128>}, {pipeline_mode = #tpu.pipeline_mode<synchronous>, transform_indices = @transform_3, window_bounds = array<i64: 128, 256>}, {pipeline_mode = #tpu.pipeline_mode<synchronous>, transform_indices = @transform_4, window_bounds = array<i64: 1, 256>}, {pipeline_mode = #tpu.pipeline_mode<synchronous>, transform_indices = @transform_5, window_bounds = array<i64: 256, 128>}, {pipeline_mode = #tpu.pipeline_mode<synchronous>, transform_indices = @transform_6, window_bounds = array<i64: 1, 128>}, {transform_indices = @transform_7, window_bounds = array<i64: 8, 128>}]} {
    %c0 = arith.constant 0 : index
    %c0_0 = arith.constant 0 : index
    %0 = vector.load %arg1[%c0, %c0_0] : memref<8x32xf32, #tpu.memory_space<vmem>>, vector<8x32xf32>
    %1 = arith.truncf %0 : vector<8x32xf32> to vector<8x32xbf16>
    %c0_1 = arith.constant 0 : index
    %c0_2 = arith.constant 0 : index
    %2 = vector.load %arg2[%c0_1, %c0_2] : memref<32x128xbf16, #tpu.memory_space<vmem>>, vector<32x128xbf16>
    %cst = arith.constant dense<0.000000e+00> : vector<8x128xf32>
    %3 = tpu.matmul %1, %2, %cst {dimension_numbers = #tpu.dot_dimension_numbers<[1], [0], [0], [1], [0, 0, 1, 1], [], []>} : vector<8x32xbf16>, vector<32x128xbf16>, vector<8x128xf32> -> vector<8x128xf32>
    %c0_3 = arith.constant 0 : index
    %c0_4 = arith.constant 0 : index
    %4 = vector.load %arg3[%c0_3, %c0_4] : memref<1x128xf32, #tpu.memory_space<vmem>>, vector<1x128xf32>
    %5 = vector.broadcast %4 : vector<1x128xf32> to vector<8x128xf32>
    %6 = arith.addf %3, %5 : vector<8x128xf32>
    %cst_5 = arith.constant 0.000000e+00 : f32
    %7 = vector.broadcast %cst_5 : f32 to vector<8x128xf32>
    %8 = arith.maximumf %6, %7 : vector<8x128xf32>
    %9 = arith.truncf %8 : vector<8x128xf32> to vector<8x128xbf16>
    %c0_6 = arith.constant 0 : index
    %c0_7 = arith.constant 0 : index
    %10 = vector.load %arg4[%c0_6, %c0_7] : memref<128x256xbf16, #tpu.memory_space<vmem>>, vector<128x256xbf16>
    %cst_8 = arith.constant dense<0.000000e+00> : vector<8x256xf32>
    %11 = tpu.matmul %9, %10, %cst_8 {dimension_numbers = #tpu.dot_dimension_numbers<[1], [0], [0], [1], [0, 0, 1, 1], [], []>} : vector<8x128xbf16>, vector<128x256xbf16>, vector<8x256xf32> -> vector<8x256xf32>
    %c0_9 = arith.constant 0 : index
    %c0_10 = arith.constant 0 : index
    %12 = vector.load %arg5[%c0_9, %c0_10] : memref<1x256xf32, #tpu.memory_space<vmem>>, vector<1x256xf32>
    %13 = vector.broadcast %12 : vector<1x256xf32> to vector<8x256xf32>
    %14 = arith.addf %11, %13 : vector<8x256xf32>
    %cst_11 = arith.constant 0.000000e+00 : f32
    %15 = vector.broadcast %cst_11 : f32 to vector<8x256xf32>
    %16 = arith.maximumf %14, %15 : vector<8x256xf32>
    %17 = arith.truncf %16 : vector<8x256xf32> to vector<8x256xbf16>
    %c0_12 = arith.constant 0 : index
    %c0_13 = arith.constant 0 : index
    %18 = vector.load %arg6[%c0_12, %c0_13] : memref<256x128xbf16, #tpu.memory_space<vmem>>, vector<256x128xbf16>
    %cst_14 = arith.constant dense<0.000000e+00> : vector<8x128xf32>
    %19 = tpu.matmul %17, %18, %cst_14 {dimension_numbers = #tpu.dot_dimension_numbers<[1], [0], [0], [1], [0, 0, 1, 1], [], []>} : vector<8x256xbf16>, vector<256x128xbf16>, vector<8x128xf32> -> vector<8x128xf32>
    %c0_15 = arith.constant 0 : index
    %c0_16 = arith.constant 0 : index
    %20 = vector.load %arg7[%c0_15, %c0_16] : memref<1x128xf32, #tpu.memory_space<vmem>>, vector<1x128xf32>
    %21 = vector.broadcast %20 : vector<1x128xf32> to vector<8x128xf32>
    %22 = arith.addf %19, %21 : vector<8x128xf32>
    %23 = math.tanh %22 : vector<8x128xf32>
    %24 = arith.truncf %23 : vector<8x128xf32> to vector<8x128xbf16>
    %c0_17 = arith.constant 0 : index
    %c0_18 = arith.constant 0 : index
    %25 = vector.load %arg8[%c0_17, %c0_18] : memref<8x128xbf16, #tpu.memory_space<vmem>>, vector<8x128xbf16>
    tpu.vector_store %arg8[%c0_17, %c0_18], %24 {strides = array<i32>} : memref<8x128xbf16, #tpu.memory_space<vmem>>, vector<8x128xbf16>,
    return
  }
  func.func @transform_0(%arg0: i32) -> (i32, i32) {
    %c0_i32 = arith.constant 0 : i32
    %c0_i32_0 = arith.constant 0 : i32
    return %arg0, %c0_i32 : i32, i32
  }
  func.func @transform_1(%arg0: i32) -> (i32, i32) {
    %c0_i32 = arith.constant 0 : i32
    %c0_i32_0 = arith.constant 0 : i32
    %c0_i32_1 = arith.constant 0 : i32
    return %c0_i32, %c0_i32_0 : i32, i32
  }
  func.func @transform_2(%arg0: i32) -> (i32, i32) {
    %c0_i32 = arith.constant 0 : i32
    %c0_i32_0 = arith.constant 0 : i32
    %c0_i32_1 = arith.constant 0 : i32
    return %c0_i32, %c0_i32_0 : i32, i32
  }
  func.func @transform_3(%arg0: i32) -> (i32, i32) {
    %c0_i32 = arith.constant 0 : i32
    %c0_i32_0 = arith.constant 0 : i32
    %c0_i32_1 = arith.constant 0 : i32
    return %c0_i32, %c0_i32_0 : i32, i32
  }
  func.func @transform_4(%arg0: i32) -> (i32, i32) {
    %c0_i32 = arith.constant 0 : i32
    %c0_i32_0 = arith.constant 0 : i32
    %c0_i32_1 = arith.constant 0 : i32
    return %c0_i32, %c0_i32_0 : i32, i32
  }
  func.func @transform_5(%arg0: i32) -> (i32, i32) {
    %c0_i32 = arith.constant 0 : i32
    %c0_i32_0 = arith.constant 0 : i32
    %c0_i32_1 = arith.constant 0 : i32
    return %c0_i32, %c0_i32_0 : i32, i32
  }
  func.func @transform_6(%arg0: i32) -> (i32, i32) {
    %c0_i32 = arith.constant 0 : i32
    %c0_i32_0 = arith.constant 0 : i32
    %c0_i32_1 = arith.constant 0 : i32
    return %c0_i32, %c0_i32_0 : i32, i32
  }
  func.func @transform_7(%arg0: i32) -> (i32, i32) {
    %c0_i32 = arith.constant 0 : i32
    %c0_i32_0 = arith.constant 0 : i32
    return %arg0, %c0_i32 : i32, i32
  }
}

</mosaic_0001>

<bundles_post_ra>
// kernel: tpu_custom_call.1
= control target key start
LH: loop header
LB: loop body
LE: loop exit
PB: predicated region body
PF: predicated region fallthrough
CT: control target
= control target key end

     0   :  { %12 = vsyncpa [#allocation3], 0  ;;  %s827_s0 = inlined_call_operand.hbm [shape: f32[8,32], index: 0, kind: input, shape index: {}]   ;;  %s828_s1 = inlined_call_operand.hbm [shape: bf16[32,128], index: 1, kind: input, shape index: {}]   ;;  %s829_s2 = inlined_call_operand.vmem [shape: f32[1,128], index: 2, kind: input, shape index: {}]   ;;  %s830_s3 = inlined_call_operand.hbm [shape: bf16[128,256], index: 3, kind: input, shape index: {}]   ;;  %s831_s4 = inlined_call_operand.vmem [shape: f32[1,256], index: 4, kind: input, shape index: {}]   ;;  %s832_s5 = inlined_call_operand.hbm [shape: bf16[256,128], index: 5, kind: input, shape index: {}]   ;;  %s833_s6 = inlined_call_operand.vmem [shape: f32[1,128], index: 6, kind: input, shape index: {}]   ;;  %s834_s7 = inlined_call_operand.hbm [shape: bf16[8,128], index: 7, kind: output, shape index: {}]  }
   0x1   :  { %13 = vsyncpa [#allocation6], 0 }
   0x2   :  { %14 = vsyncpa [#allocation9], 0  ;;  %s31_s26 = sshll.u32 %s828_s1, 4  ;;  %s32_s26 = int_to_ptr.hbm [resolvable:$true] %s31_s26 }
   0x3   :  { %15 = vsyncpa [#allocation4], 0  ;;  %s754_s27 = smov [#allocation5]   ;;  %s21_s8 = sshll.u32 %s827_s0, 4  ;;  %s22_s8 = int_to_ptr.hbm [resolvable:$true] %s21_s8 }
   0x4   :  { %s33_s28 = sshll.u32 %s754_s27, 4  ;;  %s755_s9 = smov 64   ;;  %s34_s28 = int_to_ptr.vmem [resolvable:$true] %s33_s28 }
   0x5   :  { %s756_s10 = smov 4   ;;  %s757_s11 = smov [#allocation2]  }
   0x6   :  { %39 = dma.hbm_to_vmem [thread:$0]  %s32_s26, 256, %s34_s28, [#allocation6], %s755_s9, %s755_s9, %s756_s10  }
   0x7   :  { %s23_s12 = sshll.u32 %s757_s11, 4  ;;  %s46_s15 = sshll.u32 %s830_s3, 4  ;;  %s24_s12 = int_to_ptr.vmem [resolvable:$true] %s23_s12  ;;  %s47_s15 = int_to_ptr.hbm [resolvable:$true] %s46_s15 }
   0x8   :  { %26 = dma.hbm_to_vmem [thread:$0]  %s22_s8, 128, %s24_s12, [#allocation3]  }
   0x9   :  { %s758_s1 = smov [#allocation7]   ;;  %s61_s0 = sshll.u32 %s832_s5, 4  ;;  %s62_s0 = int_to_ptr.hbm [resolvable:$true] %s61_s0 }
   0xa   :  { %s48_s16 = sshll.u32 %s758_s1, 4  ;;  %s759_s19 = smov 128   ;;  %s49_s16 = int_to_ptr.vmem [resolvable:$true] %s48_s16 }
   0xb   :  { %s760_s20 = smov 8   ;;  %s761_s21 = smov [#allocation8]  }
   0xc   :  { %54 = dma.hbm_to_vmem [thread:$0]  %s47_s15, 2048, %s49_s16, [#allocation6], %s759_s19, %s759_s19, %s760_s20  }
   0xd   :  { %s63_s22 = sshll.u32 %s761_s21, 4  ;;  %s64_s22 = int_to_ptr.vmem [resolvable:$true] %s63_s22 }
   0xe   :  { %69 = dma.hbm_to_vmem [thread:$0]  %s62_s0, 2048, %s64_s22, [#allocation9], %s755_s9, %s755_s9, %s756_s10  }
   0xf   :  { %746 = dma.done.wait [#allocation3], 128  }
  0x10   :  { %747 = vsyncadd [#allocation3], 4294967168 }
  0x11   :  { %748 = dma.done.wait [#allocation6], 2304  }
  0x12   :  { %749 = vsyncadd [#allocation6], 4294964992 }
  0x13   :  { %750 = dma.done.wait [#allocation9], 2048  }
  0x14   :  { %751 = vsyncadd [#allocation9], 4294965248  ;;  %v580_v0 = vld [vmem:[#allocation5 + $0x8] sm:$0xff]  ;;  %v579_v1 = vld [vmem:[#allocation5] sm:$0xff]  ;;  %vm111_vm0 = vcmask 261120   ;;  %s430_s29 = sshll.u32 %s834_s7, 4  ;;  %s431_s29 = int_to_ptr.hbm [resolvable:$true] %s430_s29 }
  0x15   :  { %v89_v2 = vld [vmem:[#allocation2] sm:$0xff]  ;;  %v509_v3 = vld [vmem:[#allocation7 + $0x70] sm:$0xf]  ;;  %v596_v4 = vld [vmem:[#allocation7 + $0x74] sm:$0xf0]  ;;  %121 = vmatpush.bf16.msra.mxu0 %v580_v0 }
  0x16   :  { %v595_v5 = vld [vmem:[#allocation7 + $0x74] sm:$0xf]  ;;  %v510_v6 = vor.u32 %v596_v4, %v509_v3  ;;  %v511_v7 = vld [vmem:[#allocation7 + $0x78] sm:$0xf0]  ;;  %v501_v8 = vld [vmem:[#allocation7 + $0x60] sm:$0xf]  ;;  %v90_v14 = vpack.c.bf16 %v89_v2, %v89_v2 }
  0x17   :  { %v594_v9 = vld [vmem:[#allocation7 + $0x64] sm:$0xf0]  ;;  %v514_v10 = vor.u32 %v595_v5, %v511_v7  ;;  %v593_v11 = vld [vmem:[#allocation7 + $0x64] sm:$0xf]  ;;  %v503_v12 = vld [vmem:[#allocation7 + $0x68] sm:$0xf0] }
  0x18   :  { %232 = vmatpush.bf16.msra.mxu1 %v510_v6  ;;  %v502_v13 = vor.u32 %v594_v9, %v501_v8  ;;  %v506_v15 = vor.u32 %v593_v11, %v503_v12  ;;  %v493_v16 = vld [vmem:[#allocation7 + $0x50] sm:$0xf]  ;;  %v592_v17 = vld [vmem:[#allocation7 + $0x54] sm:$0xf0]  ;;  %v591_v18 = vld [vmem:[#allocation7 + $0x54] sm:$0xf] }
  0x19   :  { %245 = vmatpush.bf16.msra.mxu2 %v514_v10  ;;  %122 = vmatpush.bf16.msra.mxu0 %v579_v1  ;;  %v495_v19 = vld [vmem:[#allocation7 + $0x58] sm:$0xf0]  ;;  %v494_v20 = vor.u32 %v592_v17, %v493_v16  ;;  %v485_v21 = vld [vmem:[#allocation7 + $0x40] sm:$0xf]  ;;  %v590_v23 = vld [vmem:[#allocation7 + $0x44] sm:$0xf0] }
  0x1a   :  { %v498_v22 = vor.u32 %v591_v18, %v495_v19  ;;  %v589_v24 = vld [vmem:[#allocation7 + $0x44] sm:$0xf]  ;;  %v487_v25 = vld [vmem:[#allocation7 + $0x48] sm:$0xf0]  ;;  %v486_v26 = vor.u32 %v590_v23, %v485_v21  ;;  %v477_v28 = vld [vmem:[#allocation7 + $0x30] sm:$0xf] }
  0x1b   :  { %v490_v27 = vor.u32 %v589_v24, %v487_v25  ;;  %v588_v29 = vld [vmem:[#allocation7 + $0x34] sm:$0xf0]  ;;  %v587_v30 = vld [vmem:[#allocation7 + $0x34] sm:$0xf]  ;;  %v479_v31 = vld [vmem:[#allocation7 + $0x38] sm:$0xf0] }
  0x1c   :  { %233 = vmatpush.bf16.msra.mxu1 %v502_v13  ;;  %450 = vmatmul.msk.bf16.vlgmr.msra.gmra.mxu0 %vm111_vm0, %v90_v14  ;;  %v478_v32 = vor.u32 %v588_v29, %v477_v28  ;;  %v482_v33 = vor.u32 %v587_v30, %v479_v31  ;;  %v469_v34 = vld [vmem:[#allocation7 + $0x20] sm:$0xf]  ;;  %v586_v35 = vld [vmem:[#allocation7 + $0x24] sm:$0xf0]  ;;  %v585_v36 = vld [vmem:[#allocation7 + $0x24] sm:$0xf] }
  0x1d   :  { %246 = vmatpush.bf16.msra.mxu2 %v506_v15  ;;  %v471_v37 = vld [vmem:[#allocation7 + $0x28] sm:$0xf0]  ;;  %v470_v38 = vor.u32 %v586_v35, %v469_v34  ;;  %v461_v40 = vld [vmem:[#allocation7 + $0x10] sm:$0xf]  ;;  %v584_v41 = vld [vmem:[#allocation7 + $0x14] sm:$0xf0] }
  0x1e   :  { %v474_v39 = vor.u32 %v585_v36, %v471_v37  ;;  %v583_v42 = vld [vmem:[#allocation7 + $0x14] sm:$0xf]  ;;  %v462_v43 = vor.u32 %v584_v41, %v461_v40  ;;  %v463_v44 = vld [vmem:[#allocation7 + $0x18] sm:$0xf0]  ;;  %v453_v46 = vld [vmem:[#allocation7] sm:$0xf] }
  0x1f   :  { %v466_v45 = vor.u32 %v583_v42, %v463_v44  ;;  %v582_v47 = vld [vmem:[#allocation7 + $0x4] sm:$0xf0]  ;;  %v581_v48 = vld [vmem:[#allocation7 + $0x4] sm:$0xf]  ;;  %v455_v50 = vld [vmem:[#allocation7 + $0x8] sm:$0xf0] }
  0x20   :  { %234 = vmatpush.bf16.msra.mxu1 %v494_v20  ;;  %v454_v49 = vor.u32 %v582_v47, %v453_v46  ;;  %v458_v51 = vor.u32 %v581_v48, %v455_v50  ;;  %v604_v52 = vld [vmem:[#allocation8 + $0x38] sm:$0xff]  ;;  %v603_v54 = vld [vmem:[#allocation8 + $0x30] sm:$0xff]  ;;  %v602_v56 = vld [vmem:[#allocation8 + $0x28] sm:$0xff] }
  0x21   :  { %247 = vmatpush.bf16.msra.mxu2 %v498_v22  ;;  %v612_v53 = vld [vmem:[#allocation8 + $0x78] sm:$0xff]  ;;  %394 = vmatpush.bf16.msra.mxu3 %v604_v52  ;;  %v611_v55 = vld [vmem:[#allocation8 + $0x70] sm:$0xff]  ;;  %v610_v57 = vld [vmem:[#allocation8 + $0x68] sm:$0xff] }
  0x22   :  { %407 = vmatpush.bf16.msrb.mxu0 %v612_v53  ;;  %v601_v58 = vld [vmem:[#allocation8 + $0x20] sm:$0xff]  ;;  %v600_v60 = vld [vmem:[#allocation8 + $0x18] sm:$0xff]  ;;  %v599_v62 = vld [vmem:[#allocation8 + $0x10] sm:$0xff] }
  0x23   :  { %v609_v59 = vld [vmem:[#allocation8 + $0x60] sm:$0xff]  ;;  %v608_v61 = vld [vmem:[#allocation8 + $0x58] sm:$0xff]  ;;  %v622_v63 = vld [vmem:[%s829_s2] ss:$0 sm:$0xff] }
  0x24   :  { %235 = vmatpush.bf16.msra.mxu1 %v486_v26  ;;  %v598_v5 = vld [vmem:[#allocation8 + $0x8] sm:$0xff]  ;;  %v607_v6 = vld [vmem:[#allocation8 + $0x50] sm:$0xff]  ;;  %v597_v7 = vld [vmem:[#allocation8] sm:$0xff] }
  0x25   :  { %248 = vmatpush.bf16.msra.mxu2 %v490_v27  ;;  %395 = vmatpush.bf16.msra.mxu3 %v603_v54  ;;  %v606_v8 = vld [vmem:[#allocation8 + $0x48] sm:$0xff]  ;;  %v605_v9 = vld [vmem:[#allocation8 + $0x40] sm:$0xff] }
  0x26   :  { %408 = vmatpush.bf16.msrb.mxu0 %v611_v55  ;;  %v146_v10 = vld [vmem:[%s831_s4] sm:$0x3]  ;;  %s762_s4 = smov [#allocation10]  }
  0x27   :  { %v148_v11 = vperm.slane %v146_v10, 0  ;;  %v149_v15 = vperm.slane %v146_v10, 1  ;;  %v623_v23 = vld [vmem:[%s833_s6] ss:$0 sm:$0xff]  ;;  %s428_s26 = sshll.u32 %s762_s4, 4  ;;  %s429_s26 = int_to_ptr.vmem [resolvable:$true] %s428_s26 }
  0x28   :  { %236 = vmatpush.bf16.msra.mxu1 %v478_v32 }
  0x29   :  { %249 = vmatpush.bf16.msra.mxu2 %v482_v33  ;;  %396 = vmatpush.bf16.msra.mxu3 %v602_v56 }
  0x2a   :  { %409 = vmatpush.bf16.msrb.mxu0 %v610_v57 }
  0x2c   :  { %237 = vmatpush.bf16.msra.mxu1 %v470_v38 }
  0x2d   :  { %250 = vmatpush.bf16.msra.mxu2 %v474_v39  ;;  %397 = vmatpush.bf16.msra.mxu3 %v601_v58 }
  0x2e   :  { %410 = vmatpush.bf16.msrb.mxu0 %v609_v59 }
  0x30   :  { %238 = vmatpush.bf16.msra.mxu1 %v462_v43 }
  0x31   :  { %251 = vmatpush.bf16.msra.mxu2 %v466_v45  ;;  %398 = vmatpush.bf16.msra.mxu3 %v600_v60 }
  0x32   :  { %411 = vmatpush.bf16.msrb.mxu0 %v608_v61 }
  0x34   :  { %239 = vmatpush.bf16.msra.mxu1 %v454_v49 }
  0x35   :  { %252 = vmatpush.bf16.msra.mxu2 %v458_v51  ;;  %399 = vmatpush.bf16.msra.mxu3 %v599_v62 }
  0x36   :  { %412 = vmatpush.bf16.msrb.mxu0 %v607_v6 }
  0x39   :  { %400 = vmatpush.bf16.msra.mxu3 %v598_v5 }
  0x3a   :  { %413 = vmatpush.bf16.msrb.mxu0 %v606_v8 }
  0x3d   :  { %401 = vmatpush.bf16.msra.mxu3 %v597_v7 }
  0x3e   :  { %414 = vmatpush.bf16.msrb.mxu0 %v605_v9 }
  0x99   :  { %v124_v0 = vpop.f32.mrf.mxu0 }
  0x9a   :  { %v125_v1 = vadd.f32 %v622_v63, %v124_v0 }
  0x9c   :  { %v128_v2 = vmax.f32 %v125_v1, 0.0 }
  0x9e   :  { %v129_v3 = vpack.c.bf16 %v128_v2, %v128_v2 }
  0xa0   :  { %240 = vmatmul.bf16.vlgmr.msra.gmra.mxu1 %v129_v3  ;;  %253 = vmatmul.bf16.vlgmr.msra.gmra.mxu2 %v129_v3 }
  0xa1   :  { %v126_v4 = vpop.f32.mrf.mxu0 }
 0x11d   :  { %v241_v12 = vpop.f32.mrf.mxu1 }
 0x11e   :  { %v242_v13 = vadd.f32 %v241_v12, %v148_v11 }
 0x120   :  { %v258_v14 = vmax.f32 %v242_v13, 0.0 }
 0x122   :  { %v260_v16 = vpack.c.bf16 %v258_v14, %v258_v14 }
 0x123   :  { %v254_v17 = vpop.f32.mrf.mxu2 }
 0x124   :  { %v255_v18 = vadd.f32 %v254_v17, %v149_v15  ;;  %402 = vmatmul.bf16.vlgmr.msra.gmra.mxu3 %v260_v16 }
 0x125   :  { %v243_v19 = vpop.f32.mrf.mxu1 }
 0x126   :  { %v259_v20 = vmax.f32 %v255_v18, 0.0 }
 0x128   :  { %v261_v21 = vpack.c.bf16 %v259_v20, %v259_v20 }
 0x12a   :  { %415 = vmatmul.bf16.vlgmr.msrb.gmra.mxu0 %v261_v21 }
 0x12b   :  { %v256_v22 = vpop.f32.mrf.mxu2 }
 0x1a7   :  { %v403_v24 = vpop.f32.mrf.mxu3  ;;  %v416_v25 = vpop.f32.mrf.mxu0 }
 0x1a8   :  { %v404_v26 = vadd.f32 %v623_v23, %v403_v24 }
 0x1aa   :  { %v417_v27 = vadd.f32 %v416_v25, %v404_v26 }
 0x1ac   :  { %624 = vtanh.f32 %v417_v27 }
 0x1af   :  { %v405_v28 = vpop.f32.mrf.mxu3  ;;  %v418_v29 = vpop.f32.mrf.mxu0 }
 0x1b2   :  { %v625_v30 = vpop.eup %624 }
 0x1b3   :  { %v421_v31 = vpack.c.bf16 %v625_v30, %v625_v30 }
 0x1b5   :  { %422 = vst [vmem:[#allocation10] sm:$0xf] %v421_v31 }
 0x1b6   :  { %433 = dma.vmem_to_hbm [thread:$0]  %s429_s26, 64, %s431_s29, [#allocation4]  }
 0x1b7   :  { %752 = dma.done.wait [#allocation4], 64  }
 0x1b8   :  { %753 = vsyncadd [#allocation4], 4294967232 }
 0x1b9   :  { %438 = vsyncpa [#allocation3], 1 }
 0x1ba   :  { %439 = vsyncpa [#allocation6], 1 }
 0x1bb   :  { %440 = vsyncpa [#allocation9], 1 }
 0x1bc   :  { %441 = vsyncpa [#allocation4], 1 }

</bundles_post_ra>
